<compile_context>
chip_gen: v7x
topology: tpu7x:2x2x1
jax: 0.10.0
libtpu: 0.0.40
codegen_flags: <defaults>
</compile_context>

<pallas_src>
import jax
import jax.numpy as jnp
from jax.experimental import pallas as pl
from jax.experimental.pallas import tpu as pltpu

_LANE = 128


# ----------------------------------------------------------------------------
# Kernels
# ----------------------------------------------------------------------------
def _fused_resident_kernel(x_ref, w0t_ref, b0_ref, w1t_ref, b1_ref, o_ref):
    x = x_ref[...]                                     # [TB, Hp] activation tile
    h = jnp.maximum(x, 0).astype(w0t_ref.dtype)        # activation(input)
    # F.linear(h, mask*W0, b0) == h @ (mask*W0).T + b0 ; mask-apply + transpose
    # were done once in the wrapper, so this is a plain MXU matmul w/ f32 acc.
    h = jnp.dot(h, w0t_ref[...], preferred_element_type=jnp.float32)
    h = jnp.maximum(h + b0_ref[...], 0.0)              # bias + activation
    # TODO(synk): dropout with p=0.0 is identity (eval); nonzero p needs pltpu.prng_*.
    h = jnp.dot(h.astype(w1t_ref.dtype), w1t_ref[...],
                preferred_element_type=jnp.float32)
    h = h + b1_ref[...]
    # Residual uses the pre-ReLU input x; epilogue math in f32.
    o_ref[...] = (x.astype(jnp.float32) + h).astype(o_ref.dtype)


def _tiled_linear_relu_kernel(x_ref, w_ref, b_ref, o_ref, acc_ref):
    # h = relu( relu(x) @ W + b ), K-reduction over grid axis 2.
    @pl.when(pl.program_id(2) == 0)
    def _():
        acc_ref[...] = jnp.zeros_like(acc_ref)

    acc_ref[...] += jnp.dot(jnp.maximum(x_ref[...], 0).astype(w_ref.dtype),
                            w_ref[...], preferred_element_type=jnp.float32)

    @pl.when(pl.program_id(2) == pl.num_programs(2) - 1)
    def _():
        o_ref[...] = jnp.maximum(acc_ref[...] + b_ref[...], 0.0).astype(o_ref.dtype)


def _tiled_linear_residual_kernel(h_ref, w_ref, b_ref, x_ref, o_ref, acc_ref):
    # out = x + h @ W + b , K-reduction over grid axis 2.
    @pl.when(pl.program_id(2) == 0)
    def _():
        acc_ref[...] = jnp.zeros_like(acc_ref)

    acc_ref[...] += jnp.dot(h_ref[...].astype(w_ref.dtype), w_ref[...],
                            preferred_element_type=jnp.float32)

    @pl.when(pl.program_id(2) == pl.num_programs(2) - 1)
    def _():
        o_ref[...] = (x_ref[...].astype(jnp.float32) + acc_ref[...]
                      + b_ref[...]).astype(o_ref.dtype)


# ----------------------------------------------------------------------------
# Sizing helpers
# ----------------------------------------------------------------------------
def _sublane_multiple(dtype):
    # 8 for f32, 16 for bf16, 32 for int8/fp8 (sub-32-bit packs along sublanes).
    return max(8, 32 // jnp.dtype(dtype).itemsize)


def _vmem_budget_bytes():
    # ~2/3 of physical VMEM (128 MiB on v5e/v6e, 64 MiB per-TC on v7x).
    try:
        cap = int(pltpu.get_tpu_info().vmem_capacity_bytes)
    except Exception:
        cap = 64 * 1024 * 1024
    return (2 * cap) // 3


def _pick_batch_tile_resident(B, Hp, act_itemsize, w_itemsize, vmem_budget, sub,
                              min_steps=8):
    weight_bytes = 2 * Hp * Hp * w_itemsize + 2 * Hp * 4   # single-buffered residents
    avail = vmem_budget - weight_bytes
    # x/out tiles double-buffered + ~3 f32 temporaries live inside the kernel.
    per_row = 2 * 2 * Hp * act_itemsize + 3 * Hp * 4
    tb = avail // per_row if avail > per_row * sub else sub
    tb = min(int(tb), 1024)
    # Keep >= min_steps grid steps when the batch allows it so prefetch /
    # writeback overlap compute and megacore sharding has work to split.
    tb = min(tb, max(sub, -(-B // min_steps)))
    return max(sub, (tb // sub) * sub)


# ----------------------------------------------------------------------------
# pallas_call wrappers
# ----------------------------------------------------------------------------
def _resident_call(x_in, w0t, b0_2d, w1t, b1_2d, act_dtype, vmem_budget, sub):
    B, Hp = x_in.shape
    act_itemsize = jnp.dtype(act_dtype).itemsize
    w_itemsize = jnp.dtype(w0t.dtype).itemsize
    tb = _pick_batch_tile_resident(B, Hp, act_itemsize, w_itemsize,
                                   vmem_budget, sub)

    def resident(shape):
        # Constant index_map -> single-buffered (a 2nd pipeline buffer is waste).
        return pl.BlockSpec(shape, lambda i, n=len(shape): (0,) * n,
                            pipeline_mode=pl.Buffered(1))

    vmem_need = (2 * Hp * Hp * w_itemsize + 2 * Hp * 4       # resident weights/biases
                 + 2 * 2 * tb * Hp * act_itemsize            # double-buffered x / out
                 + 3 * tb * Hp * 4)                          # f32 intermediates
    vmem_limit = int(min(max(2 * vmem_need, 32 * 1024 * 1024), vmem_budget))

    cost = pl.CostEstimate(
        flops=4 * B * Hp * Hp,                               # two B*Hp*Hp matmuls
        transcendentals=0,
        bytes_accessed=(2 * B * Hp * act_itemsize
                        + 2 * Hp * Hp * w_itemsize + 2 * Hp * 4),
    )

    return pl.pallas_call(
        _fused_resident_kernel,
        out_shape=jax.ShapeDtypeStruct((B, Hp), act_dtype),
        grid_spec=pltpu.PrefetchScalarGridSpec(
            num_scalar_prefetch=0,
            grid=(pl.cdiv(B, tb),),                          # ragged last block OK
            in_specs=[
                pl.BlockSpec((tb, Hp), lambda i: (i, 0)),    # x tile (pipelined)
                resident((Hp, Hp)),                          # (mask*W0).T
                resident((1, Hp)),                           # b0
                resident((Hp, Hp)),                          # (mask*W1).T
                resident((1, Hp)),                           # b1
            ],
            out_specs=pl.BlockSpec((tb, Hp), lambda i: (i, 0)),
        ),
        compiler_params=pltpu.CompilerParams(
            dimension_semantics=("parallel",),
            vmem_limit_bytes=vmem_limit,
        ),
        cost_estimate=cost,
    )(x_in, w0t, b0_2d, w1t, b1_2d)


def _tiled_call(x_in, w0t, b0_2d, w1t, b1_2d, act_dtype, vmem_budget, sub,
                min_steps=8):
    # Fallback when 2*Hp^2 weights do not fit resident in ~1/3 of the VMEM
    # budget: two K/N-tiled matmul passes with f32 accumulator scratch.
    B, Hp = x_in.shape
    act_itemsize = jnp.dtype(act_dtype).itemsize
    w_itemsize = jnp.dtype(w0t.dtype).itemsize
    tn = 256 if Hp % 256 == 0 else 128                       # matches v7x MXU shape
    tk = tn
    tb = min(512, max(sub, -(-B // min_steps)))
    tb = max(sub, (tb // sub) * sub)

    vmem_need = (2 * tb * tk * act_itemsize + 2 * tk * tn * w_itemsize
                 + 2 * tn * 4 + 2 * tb * tn * act_itemsize + tb * tn * 4)
    vmem_limit = int(min(max(2 * vmem_need, 32 * 1024 * 1024), vmem_budget))

    grid = (pl.cdiv(B, tb), Hp // tn, Hp // tk)
    params = pltpu.CompilerParams(
        dimension_semantics=("parallel", "parallel", "arbitrary"),
        vmem_limit_bytes=vmem_limit,
    )

    # Pass 1: h = relu( relu(x) @ W0t + b0 )
    h = pl.pallas_call(
        _tiled_linear_relu_kernel,
        out_shape=jax.ShapeDtypeStruct((B, Hp), act_dtype),
        grid_spec=pltpu.PrefetchScalarGridSpec(
            num_scalar_prefetch=0,
            grid=grid,
            in_specs=[
                pl.BlockSpec((tb, tk), lambda i, j, k: (i, k)),
                pl.BlockSpec((tk, tn), lambda i, j, k: (k, j)),
                pl.BlockSpec((1, tn), lambda i, j, k: (0, j)),
            ],
            out_specs=pl.BlockSpec((tb, tn), lambda i, j, k: (i, j)),
            scratch_shapes=[pltpu.VMEM((tb, tn), jnp.float32)],
        ),
        compiler_params=params,
    )(x_in, w0t, b0_2d)

    # Pass 2: out = x + h @ W1t + b1
    return pl.pallas_call(
        _tiled_linear_residual_kernel,
        out_shape=jax.ShapeDtypeStruct((B, Hp), act_dtype),
        grid_spec=pltpu.PrefetchScalarGridSpec(
            num_scalar_prefetch=0,
            grid=grid,
            in_specs=[
                pl.BlockSpec((tb, tk), lambda i, j, k: (i, k)),
                pl.BlockSpec((tk, tn), lambda i, j, k: (k, j)),
                pl.BlockSpec((1, tn), lambda i, j, k: (0, j)),
                pl.BlockSpec((tb, tn), lambda i, j, k: (i, j)),   # residual x
            ],
            out_specs=pl.BlockSpec((tb, tn), lambda i, j, k: (i, j)),
            scratch_shapes=[pltpu.VMEM((tb, tn), jnp.float32)],
        ),
        compiler_params=params,
    )(h, w1t, b1_2d, x_in)


def masked_residual_block(x, mask, w0, b0, w1, b1, *,
                          use_bf16_matmul=False, force_tiled=False):
    B, H = x.shape
    assert mask.shape == (H, H) and w0.shape == (H, H) and w1.shape == (H, H)
    act_dtype = x.dtype
    # Optional bf16 MXU operands (f32 accumulation + f32 bias/residual epilogue).
    w_dtype = jnp.bfloat16 if use_bf16_matmul else act_dtype
    sub = _sublane_multiple(act_dtype)

    # Fold the constant mask into the weights and pre-transpose to [in, out]
    # once in the wrapper (outside the per-tile loop).
    w0t = (mask * w0).T.astype(w_dtype)
    w1t = (mask * w1).T.astype(w_dtype)
    b0_2d = b0.reshape(1, H).astype(jnp.float32)
    b1_2d = b1.reshape(1, H).astype(jnp.float32)

    # Lane-dense feature dim: pad H up to a multiple of 128.
    Hp = -(-H // _LANE) * _LANE
    if Hp != H:
        pad = Hp - H
        x_in = jnp.pad(x, ((0, 0), (0, pad)))
        w0t = jnp.pad(w0t, ((0, pad), (0, pad)))
        w1t = jnp.pad(w1t, ((0, pad), (0, pad)))
        b0_2d = jnp.pad(b0_2d, ((0, 0), (0, pad)))
        b1_2d = jnp.pad(b1_2d, ((0, 0), (0, pad)))
    else:
        x_in = x

    vmem_budget = _vmem_budget_bytes()
    weights_fit = (2 * Hp * Hp * jnp.dtype(w_dtype).itemsize) <= (vmem_budget // 3)

    if weights_fit and not force_tiled:
        out = _resident_call(x_in, w0t, b0_2d, w1t, b1_2d, act_dtype,
                             vmem_budget, sub)
    else:
        out = _tiled_call(x_in, w0t, b0_2d, w1t, b1_2d, act_dtype,
                          vmem_budget, sub)

    return out[:, :H] if Hp != H else out


def reference(x, mask, w0, b0, w1, b1):
    h = jnp.maximum(x, 0.0)
    h = h @ (mask * w0).T + b0
    h = jnp.maximum(h, 0.0)
    h = h @ (mask * w1).T + b1
    return x + h


if __name__ == "__main__":
    B, H = 8, 32
    key = jax.random.PRNGKey(0)
    kx, kw0, kb0, kw1, kb1 = jax.random.split(key, 5)

    x = jax.random.normal(kx, (B, H), dtype=jnp.float32)

    # Deterministic MADE-style autoregressive mask [out, in].
    degrees = jnp.arange(H) % H
    mask = (degrees[:, None] >= degrees[None, :]).astype(jnp.float32)

    # Deterministic synthetic parameters.
    w0 = jax.random.normal(kw0, (H, H), dtype=jnp.float32) * 0.1
    b0 = jax.random.normal(kb0, (H,), dtype=jnp.float32) * 0.1
    w1 = jax.random.normal(kw1, (H, H), dtype=jnp.float32) * 0.1
    b1 = jax.random.normal(kb1, (H,), dtype=jnp.float32) * 0.1

    ref = reference(x, mask, w0, b0, w1, b1)

    # Default (resident-weights) path.
    out = masked_residual_block(x, mask, w0, b0, w1, b1)
    out = jax.block_until_ready(out)
    assert out.shape == (B, H)
    assert jnp.allclose(out, ref, atol=1e-5, rtol=1e-5), "resident path mismatch"

    # Exercise the large-H tiled fallback path at the small test shape too.
    out_t = masked_residual_block(x, mask, w0, b0, w1, b1, force_tiled=True)
    out_t = jax.block_until_ready(out_t)
    assert jnp.allclose(out_t, ref, atol=1e-5, rtol=1e-5), "tiled path mismatch"

    print("KERNEL_OK")
</pallas_src>

<mosaic_0001>
module attributes {stable_mosaic.version = 11 : i64} {
  func.func @_fused_resident_kernel(%arg0: i32, %arg1: memref<8x128xf32, #tpu.memory_space<vmem>>, %arg2: memref<128x128xf32, #tpu.memory_space<vmem>>, %arg3: memref<1x128xf32, #tpu.memory_space<vmem>>, %arg4: memref<128x128xf32, #tpu.memory_space<vmem>>, %arg5: memref<1x128xf32, #tpu.memory_space<vmem>>, %arg6: memref<8x128xf32, #tpu.memory_space<vmem>>) attributes {dimension_semantics = [#tpu.dimension_semantics<parallel>], iteration_bounds = array<i64: 1>, scalar_prefetch = 0 : i64, scratch_operands = 0 : i64, tpu.core_type = #tpu.core_type<tc>, window_params = [{transform_indices = @transform_0, window_bounds = array<i64: 8, 128>}, {pipeline_mode = #tpu.pipeline_mode<synchronous>, transform_indices = @transform_1, window_bounds = array<i64: 128, 128>}, {pipeline_mode = #tpu.pipeline_mode<synchronous>, transform_indices = @transform_2, window_bounds = array<i64: 1, 128>}, {pipeline_mode = #tpu.pipeline_mode<synchronous>, transform_indices = @transform_3, window_bounds = array<i64: 128, 128>}, {pipeline_mode = #tpu.pipeline_mode<synchronous>, transform_indices = @transform_4, window_bounds = array<i64: 1, 128>}, {transform_indices = @transform_5, window_bounds = array<i64: 8, 128>}]} {
    %c0 = arith.constant 0 : index
    %c0_0 = arith.constant 0 : index
    %0 = vector.load %arg1[%c0, %c0_0] : memref<8x128xf32, #tpu.memory_space<vmem>>, vector<8x128xf32>
    %cst = arith.constant 0.000000e+00 : f32
    %1 = vector.broadcast %cst : f32 to vector<8x128xf32>
    %2 = arith.maximumf %0, %1 : vector<8x128xf32>
    %c0_1 = arith.constant 0 : index
    %c0_2 = arith.constant 0 : index
    %3 = vector.load %arg2[%c0_1, %c0_2] : memref<128x128xf32, #tpu.memory_space<vmem>>, vector<128x128xf32>
    %cst_3 = arith.constant dense<0.000000e+00> : vector<8x128xf32>
    %4 = tpu.matmul %2, %3, %cst_3 {dimension_numbers = #tpu.dot_dimension_numbers<[1], [0], [0], [1], [0, 0, 1, 1], [], []>} : vector<8x128xf32>, vector<128x128xf32>, vector<8x128xf32> -> vector<8x128xf32>
    %c0_4 = arith.constant 0 : index
    %c0_5 = arith.constant 0 : index
    %5 = vector.load %arg3[%c0_4, %c0_5] : memref<1x128xf32, #tpu.memory_space<vmem>>, vector<1x128xf32>
    %6 = vector.broadcast %5 : vector<1x128xf32> to vector<8x128xf32>
    %7 = arith.addf %4, %6 : vector<8x128xf32>
    %cst_6 = arith.constant 0.000000e+00 : f32
    %8 = vector.broadcast %cst_6 : f32 to vector<8x128xf32>
    %9 = arith.maximumf %7, %8 : vector<8x128xf32>
    %c0_7 = arith.constant 0 : index
    %c0_8 = arith.constant 0 : index
    %10 = vector.load %arg4[%c0_7, %c0_8] : memref<128x128xf32, #tpu.memory_space<vmem>>, vector<128x128xf32>
    %cst_9 = arith.constant dense<0.000000e+00> : vector<8x128xf32>
    %11 = tpu.matmul %9, %10, %cst_9 {dimension_numbers = #tpu.dot_dimension_numbers<[1], [0], [0], [1], [0, 0, 1, 1], [], []>} : vector<8x128xf32>, vector<128x128xf32>, vector<8x128xf32> -> vector<8x128xf32>
    %c0_10 = arith.constant 0 : index
    %c0_11 = arith.constant 0 : index
    %12 = vector.load %arg5[%c0_10, %c0_11] : memref<1x128xf32, #tpu.memory_space<vmem>>, vector<1x128xf32>
    %13 = vector.broadcast %12 : vector<1x128xf32> to vector<8x128xf32>
    %14 = arith.addf %11, %13 : vector<8x128xf32>
    %15 = arith.addf %0, %14 : vector<8x128xf32>
    %c0_12 = arith.constant 0 : index
    %c0_13 = arith.constant 0 : index
    %16 = vector.load %arg6[%c0_12, %c0_13] : memref<8x128xf32, #tpu.memory_space<vmem>>, vector<8x128xf32>
    tpu.vector_store %arg6[%c0_12, %c0_13], %15 {strides = array<i32>} : memref<8x128xf32, #tpu.memory_space<vmem>>, vector<8x128xf32>,
    return
  }
  func.func @transform_0(%arg0: i32) -> (i32, i32) {
    %c0_i32 = arith.constant 0 : i32
    %c0_i32_0 = arith.constant 0 : i32
    return %arg0, %c0_i32 : i32, i32
  }
  func.func @transform_1(%arg0: i32) -> (i32, i32) {
    %c0_i32 = arith.constant 0 : i32
    %c0_i32_0 = arith.constant 0 : i32
    %c0_i32_1 = arith.constant 0 : i32
    return %c0_i32, %c0_i32_0 : i32, i32
  }
  func.func @transform_2(%arg0: i32) -> (i32, i32) {
    %c0_i32 = arith.constant 0 : i32
    %c0_i32_0 = arith.constant 0 : i32
    %c0_i32_1 = arith.constant 0 : i32
    return %c0_i32, %c0_i32_0 : i32, i32
  }
  func.func @transform_3(%arg0: i32) -> (i32, i32) {
    %c0_i32 = arith.constant 0 : i32
    %c0_i32_0 = arith.constant 0 : i32
    %c0_i32_1 = arith.constant 0 : i32
    return %c0_i32, %c0_i32_0 : i32, i32
  }
  func.func @transform_4(%arg0: i32) -> (i32, i32) {
    %c0_i32 = arith.constant 0 : i32
    %c0_i32_0 = arith.constant 0 : i32
    %c0_i32_1 = arith.constant 0 : i32
    return %c0_i32, %c0_i32_0 : i32, i32
  }
  func.func @transform_5(%arg0: i32) -> (i32, i32) {
    %c0_i32 = arith.constant 0 : i32
    %c0_i32_0 = arith.constant 0 : i32
    return %arg0, %c0_i32 : i32, i32
  }
}

</mosaic_0001>

<bundles_post_ra>
// kernel: tpu_custom_call.1
= control target key start
LH: loop header
LB: loop body
LE: loop exit
PB: predicated region body
PF: predicated region fallthrough
CT: control target
= control target key end

     0   :  { %10 = vsyncpa [#allocation3], 0  ;;  %s639_s0 = inlined_call_operand.hbm [shape: f32[8,128], index: 0, kind: input, shape index: {}]   ;;  %s640_s1 = inlined_call_operand.hbm [shape: f32[128,128], index: 1, kind: input, shape index: {}]   ;;  %s641_s2 = inlined_call_operand.vmem [shape: f32[1,128], index: 2, kind: input, shape index: {}]   ;;  %s642_s3 = inlined_call_operand.hbm [shape: f32[128,128], index: 3, kind: input, shape index: {}]   ;;  %s643_s4 = inlined_call_operand.vmem [shape: f32[1,128], index: 4, kind: input, shape index: {}]   ;;  %s644_s5 = inlined_call_operand.hbm [shape: f32[8,128], index: 5, kind: output, shape index: {}]  }
   0x1   :  { %11 = vsyncpa [#allocation6], 0 }
   0x2   :  { %12 = vsyncpa [#allocation4], 0  ;;  %s524_s18 = smov [#allocation5]   ;;  %s430_s22 = scalar_lea.hbm %s640_s1, 2048 }
   0x3   :  { %s28_s19 = sshll.u32 %s524_s18, 4  ;;  %p431_p0 = scmp.ne.s32.totalorder %s640_s1, %s430_s22  ;;  %s29_s19 = int_to_ptr.vmem [resolvable:$true] %s28_s19 }
   0x4   :  { %p434_p1 = scmp.lt.u32.totalorder %s430_s22, %s640_s1 }
   0x6   :  { %p436_p2 = pnand %p434_p1, %p431_p0 }
   0x8   :  { %439 = shalt.err (!%p436_p2)
}
   0x9   :  { %s440_s27 = scalar_lea.vmem %s29_s19, 2048  ;;  %p445_p4 = scmp.lt.s32.totalorder %s29_s19, %s29_s19 }
   0xa   :  { %p441_p3 = scmp.ne.s32.totalorder %s29_s19, %s440_s27  ;;  %p446_p5 = scmp.lt.s32.totalorder %s440_s27, %s440_s27 }
   0xc   :  { %p447_p6 = por %p446_p5, %p445_p4 }
   0xe   :  { %p448_p7 = pnand %p447_p6, %p441_p3 }
  0x10   :  { %451 = shalt.err (!%p448_p7)
}
  0x11   :  { %s525_s28 = smov 128   ;;  %s526_s29 = smov 8  }
  0x12   :  { %34 = dma.hbm_to_vmem [thread:$0]  %s640_s1, 2048, %s29_s19, [#allocation6], %s525_s28, %s525_s28, %s526_s29  }
  0x13   :  { %s527_s7 = smov [#allocation2]   ;;  %s528_s9 = smov [#allocation7]  }
  0x14   :  { %s19_s8 = sshll.u32 %s527_s7, 4  ;;  %s42_s10 = sshll.u32 %s528_s9, 4  ;;  %s20_s8 = int_to_ptr.vmem [resolvable:$true] %s19_s8  ;;  %s43_s10 = int_to_ptr.vmem [resolvable:$true] %s42_s10 }
  0x15   :  { %s452_s13 = scalar_lea.hbm %s639_s0, 128 }
  0x16   :  { %p453_p8 = scmp.ne.s32.totalorder %s639_s0, %s452_s13  ;;  %p456_p9 = scmp.lt.u32.totalorder %s452_s13, %s639_s0 }
  0x18   :  { %p458_p10 = pnand %p456_p9, %p453_p8 }
  0x1a   :  { %461 = shalt.err (!%p458_p10)
}
  0x1b   :  { %s462_s1 = scalar_lea.vmem %s20_s8, 128  ;;  %p467_p12 = scmp.lt.s32.totalorder %s20_s8, %s20_s8 }
  0x1c   :  { %p463_p11 = scmp.ne.s32.totalorder %s20_s8, %s462_s1  ;;  %p468_p13 = scmp.lt.s32.totalorder %s462_s1, %s462_s1 }
  0x1e   :  { %p469_p0 = por %p468_p13, %p467_p12 }
  0x20   :  { %p470_p1 = pnand %p469_p0, %p463_p11 }
  0x22   :  { %473 = shalt.err (!%p470_p1)
}
  0x23   :  { %22 = dma.hbm_to_vmem [thread:$0]  %s639_s0, 128, %s20_s8, [#allocation3]  }
  0x24   :  { %s474_s22 = scalar_lea.hbm %s642_s3, 2048 }
  0x25   :  { %p475_p2 = scmp.ne.s32.totalorder %s642_s3, %s474_s22  ;;  %p478_p3 = scmp.lt.u32.totalorder %s474_s22, %s642_s3 }
  0x27   :  { %p480_p4 = pnand %p478_p3, %p475_p2 }
  0x29   :  { %483 = shalt.err (!%p480_p4)
}
  0x2a   :  { %s484_s27 = scalar_lea.vmem %s43_s10, 2048  ;;  %p489_p6 = scmp.lt.s32.totalorder %s43_s10, %s43_s10 }
  0x2b   :  { %p485_p5 = scmp.ne.s32.totalorder %s43_s10, %s484_s27  ;;  %p490_p7 = scmp.lt.s32.totalorder %s484_s27, %s484_s27 }
  0x2d   :  { %p491_p8 = por %p490_p7, %p489_p6 }
  0x2f   :  { %p492_p9 = pnand %p491_p8, %p485_p5 }
  0x31   :  { %495 = shalt.err (!%p492_p9)
}
  0x32   :  { %48 = dma.hbm_to_vmem [thread:$0]  %s642_s3, 2048, %s43_s10, [#allocation6], %s525_s28, %s525_s28, %s526_s29  }
  0x33   :  { %518 = dma.done.wait [#allocation3], 128  }
  0x34   :  { %519 = vsyncadd [#allocation3], 4294967168 }
  0x35   :  { %520 = dma.done.wait [#allocation6], 4096  }
  0x36   :  { %521 = vsyncadd [#allocation6], 4294963200  ;;  %v529_v0 = vmov 0.0|0.0   ;;  %vm530_vm0 = vmmov 0   ;;  %v531_v1 = vmov 0.0   ;;  %v62_v2 = vld [vmem:[#allocation5] sm:$0xff] }
  0x37   :  { %373 = vmatprep.subr.bf16.mxu0 %v529_v0  ;;  %335 = vmatprep.mubr.msk.f32.mxu0 %vm530_vm0, %v531_v1  ;;  %v63_v3 = vld [vmem:[#allocation5 + $0x8] sm:$0xff]  ;;  %v64_v4 = vld [vmem:[#allocation5 + $0x10] sm:$0xff]  ;;  %v65_v6 = vld [vmem:[#allocation5 + $0x18] sm:$0xff]  ;;  %s532_s7 = smov [#allocation8]  }
  0x38   :  { %397 = vmatprep.subr.bf16.mxu1 %v529_v0  ;;  %370 = vmatprep.mubr.msk.f32.mxu1 %vm530_vm0, %v531_v1  ;;  %v374_v5 = vpack.c.bf16 %v63_v3, %v62_v2  ;;  %v377_v7 = vpack.c.bf16 %v65_v6, %v64_v4  ;;  %v66_v8 = vld [vmem:[#allocation5 + $0x20] sm:$0xff]  ;;  %v67_v9 = vld [vmem:[#allocation5 + $0x28] sm:$0xff]  ;;  %v158_v12 = vld [vmem:[#allocation7 + $0x10] sm:$0xff]  ;;  %s257_s8 = sshll.u32 %s532_s7, 4  ;;  %s258_s8 = int_to_ptr.vmem [resolvable:$true] %s257_s8 }
  0x39   :  { %v156_v10 = vld [vmem:[#allocation7] sm:$0xff]  ;;  %v157_v11 = vld [vmem:[#allocation7 + $0x8] sm:$0xff]  ;;  %v159_v13 = vld [vmem:[#allocation7 + $0x18] sm:$0xff]  ;;  %v380_v14 = vpack.c.bf16 %v67_v9, %v66_v8  ;;  %s496_s9 = scalar_lea.vmem %s258_s8, 128  ;;  %p501_p11 = scmp.lt.s32.totalorder %s258_s8, %s258_s8 }
  0x3a   :  { %375 = vmatpush3.bf16.msra.mxu0 %v374_v5  ;;  %v398_v15 = vpack.c.bf16 %v157_v11, %v156_v10  ;;  %v68_v16 = vld [vmem:[#allocation5 + $0x30] sm:$0xff]  ;;  %v69_v17 = vld [vmem:[#allocation5 + $0x38] sm:$0xff]  ;;  %v401_v18 = vpack.c.bf16 %v159_v13, %v158_v12  ;;  %v160_v19 = vld [vmem:[#allocation7 + $0x20] sm:$0xff]  ;;  %p497_p10 = scmp.ne.s32.totalorder %s258_s8, %s496_s9  ;;  %p502_p12 = scmp.lt.s32.totalorder %s496_s9, %s496_s9 }
  0x3b   :  { %376 = vmatprep.subr.bf16.mxu0 %v529_v0  ;;  %v161_v20 = vld [vmem:[#allocation7 + $0x28] sm:$0xff]  ;;  %v383_v21 = vpack.c.bf16 %v69_v17, %v68_v16  ;;  %v70_v22 = vld [vmem:[#allocation5 + $0x40] sm:$0xff]  ;;  %v162_v25 = vld [vmem:[#allocation7 + $0x30] sm:$0xff] }
  0x3c   :  { %399 = vmatpush3.bf16.msra.mxu1 %v398_v15  ;;  %v71_v23 = vld [vmem:[#allocation5 + $0x48] sm:$0xff]  ;;  %v404_v24 = vpack.c.bf16 %v161_v20, %v160_v19  ;;  %v163_v26 = vld [vmem:[#allocation7 + $0x38] sm:$0xff]  ;;  %v72_v28 = vld [vmem:[#allocation5 + $0x50] sm:$0xff]  ;;  %p503_p13 = por %p502_p12, %p501_p11 }
  0x3d   :  { %400 = vmatprep.subr.bf16.mxu1 %v529_v0  ;;  %v386_v27 = vpack.c.bf16 %v71_v23, %v70_v22  ;;  %v73_v29 = vld [vmem:[#allocation5 + $0x58] sm:$0xff]  ;;  %v407_v30 = vpack.c.bf16 %v163_v26, %v162_v25  ;;  %v164_v31 = vld [vmem:[#allocation7 + $0x40] sm:$0xff]  ;;  %v165_v32 = vld [vmem:[#allocation7 + $0x48] sm:$0xff] }
  0x3e   :  { %378 = vmatpush3.bf16.msra.mxu0 %v377_v7  ;;  %v389_v33 = vpack.c.bf16 %v73_v29, %v72_v28  ;;  %v74_v34 = vld [vmem:[#allocation5 + $0x60] sm:$0xff]  ;;  %v75_v35 = vld [vmem:[#allocation5 + $0x68] sm:$0xff]  ;;  %v410_v36 = vpack.c.bf16 %v165_v32, %v164_v31  ;;  %v166_v37 = vld [vmem:[#allocation7 + $0x50] sm:$0xff]  ;;  %p504_p0 = pnand %p503_p13, %p497_p10 }
  0x3f   :  { %379 = vmatprep.subr.bf16.mxu0 %v529_v0  ;;  %v167_v38 = vld [vmem:[#allocation7 + $0x58] sm:$0xff]  ;;  %v392_v39 = vpack.c.bf16 %v75_v35, %v74_v34  ;;  %v76_v40 = vld [vmem:[#allocation5 + $0x70] sm:$0xff]  ;;  %v168_v43 = vld [vmem:[#allocation7 + $0x60] sm:$0xff] }
  0x40   :  { %402 = vmatpush3.bf16.msra.mxu1 %v401_v18  ;;  %v77_v41 = vld [vmem:[#allocation5 + $0x78] sm:$0xff]  ;;  %v413_v42 = vpack.c.bf16 %v167_v38, %v166_v37  ;;  %v169_v44 = vld [vmem:[#allocation7 + $0x68] sm:$0xff]  ;;  %v170_v49 = vld [vmem:[#allocation7 + $0x70] sm:$0xff] }
  0x41   :  { %403 = vmatprep.subr.bf16.mxu1 %v529_v0  ;;  %v395_v45 = vpack.c.bf16 %v77_v41, %v76_v40  ;;  %v60_v46 = vld [vmem:[#allocation2] sm:$0xff]  ;;  %v416_v47 = vpack.c.bf16 %v169_v44, %v168_v43 }
  0x42   :  { %381 = vmatpush3.bf16.msra.mxu0 %v380_v14  ;;  %v61_v48 = vmax.f32 %v60_v46, 0.0  ;;  %v171_v50 = vld [vmem:[#allocation7 + $0x78] sm:$0xff] }
  0x43   :  { %382 = vmatprep.subr.bf16.mxu0 %v529_v0  ;;  %v419_v51 = vpack.c.bf16 %v171_v50, %v170_v49  ;;  %v267_v52 = vld [vmem:[%s641_s2] ss:$0 sm:$0xff] }
  0x44   :  { %405 = vmatpush3.bf16.msra.mxu1 %v404_v24  ;;  %v268_v57 = vld [vmem:[%s643_s4] ss:$0 sm:$0xff] }
  0x45   :  { %406 = vmatprep.subr.bf16.mxu1 %v529_v0 }
  0x46   :  { %384 = vmatpush3.bf16.msra.mxu0 %v383_v21 }
  0x47   :  { %385 = vmatprep.subr.bf16.mxu0 %v529_v0 }
  0x48   :  { %408 = vmatpush3.bf16.msra.mxu1 %v407_v30 }
  0x49   :  { %409 = vmatprep.subr.bf16.mxu1 %v529_v0 }
  0x4a   :  { %387 = vmatpush3.bf16.msra.mxu0 %v386_v27 }
  0x4b   :  { %388 = vmatprep.subr.bf16.mxu0 %v529_v0 }
  0x4c   :  { %411 = vmatpush3.bf16.msra.mxu1 %v410_v36 }
  0x4d   :  { %412 = vmatprep.subr.bf16.mxu1 %v529_v0 }
  0x4e   :  { %390 = vmatpush3.bf16.msra.mxu0 %v389_v33 }
  0x4f   :  { %391 = vmatprep.subr.bf16.mxu0 %v529_v0 }
  0x50   :  { %414 = vmatpush3.bf16.msra.mxu1 %v413_v42 }
  0x51   :  { %415 = vmatprep.subr.bf16.mxu1 %v529_v0 }
  0x52   :  { %393 = vmatpush3.bf16.msra.mxu0 %v392_v39 }
  0x53   :  { %394 = vmatprep.subr.bf16.mxu0 %v529_v0 }
  0x54   :  { %417 = vmatpush3.bf16.msra.mxu1 %v416_v47 }
  0x55   :  { %418 = vmatprep.subr.bf16.mxu1 %v529_v0 }
  0x56   :  { %396 = vmatpush3.bf16.msra.mxu0 %v395_v45 }
  0x58   :  { %420 = vmatpush3.bf16.msra.mxu1 %v419_v51 }
  0x59   :  { %336 = vmatmul.mubr.f32.vlgmr.msra.gmra.mrb[0].mxu0 %v61_v48 }
 0x12c   :  { %v151_v53 = vpop.f32.mrb[0].mxu0 }
 0x12d   :  { %v152_v54 = vadd.f32 %v267_v52, %v151_v53  ;;  %v337_v55 = vpop.f32.mrb[1].mxu0 }
 0x12f   :  { %v155_v56 = vmax.f32 %v152_v54, 0.0 }
 0x131   :  { %371 = vmatmul.mubr.f32.vlgmr.msra.gmra.mrb[0].mxu1 %v155_v56 }
 0x204   :  { %v245_v58 = vpop.f32.mrb[0].mxu1 }
 0x205   :  { %v246_v59 = vadd.f32 %v268_v57, %v245_v58  ;;  %v372_v60 = vpop.f32.mrb[1].mxu1 }
 0x207   :  { %v249_v61 = vadd.f32 %v246_v59, %v60_v46 }
 0x209   :  { %250 = vst [vmem:[#allocation8] sm:$0xff] %v249_v61 }
 0x20a   :  { %507 = shalt.err (!%p504_p0)
}
 0x20b   :  { %s508_s11 = scalar_lea.hbm %s644_s5, 128 }
 0x20c   :  { %p509_p1 = scmp.ne.s32.totalorder %s644_s5, %s508_s11  ;;  %p512_p2 = scmp.lt.u32.totalorder %s508_s11, %s644_s5 }
 0x20e   :  { %p514_p3 = pnand %p512_p2, %p509_p1 }
 0x210   :  { %517 = shalt.err (!%p514_p3)
}
 0x211   :  { %260 = dma.vmem_to_hbm [thread:$0]  %s258_s8, 128, %s644_s5, [#allocation4]  }
 0x212   :  { %522 = dma.done.wait [#allocation4], 128  }
 0x213   :  { %523 = vsyncadd [#allocation4], 4294967168 }
 0x214   :  { %264 = vsyncpa [#allocation3], 1 }
 0x215   :  { %265 = vsyncpa [#allocation6], 1 }
 0x216   :  { %266 = vsyncpa [#allocation4], 1 }

</bundles_post_ra>
